<compile_context>
chip_gen: v6e
topology: v6e:2x2x1
jax: 0.10.0
libtpu: 0.0.40
codegen_flags: <defaults>
</compile_context>

<pallas_src>
import functools
import math

import jax
import jax.numpy as jnp
from jax.experimental import pallas as pl
from jax.experimental.pallas import tpu as pltpu


def _round_up(x, m):
    return (x + m - 1) // m * m


def _conv_bn_relu_kernel(x_ref, w_ref, scale_ref, shift_ref, o_ref,
                         stage_ref, patches_ref, *,
                         bb, cin, h, w, pad, kh_sz, kw_sz, wp_im, ho):
    """One grid step: bb batch elements -> one MXU matmul + folded BN/ReLU.

    x_ref:       (bb, Cin, H, W)            raw NCHW activation block (input dtype)
    w_ref:       (Cout, KH*KW*Cin_pad)      reduction rows ordered (kh, kw, cin_pad)
    scale_ref:   (Cout, 1)                  folded BN scale (f32)
    shift_ref:   (Cout, 1)                  folded BN shift incl. conv bias (f32)
    o_ref:       (Cout, bb*Ho*Wp_im)        lane-dense output rows (pad cols stripped
                                            by the wrapper)
    stage_ref:   (Cin_pad, Hp*Wp_im+KW-1)   zero-padded, row-flattened image staging
    patches_ref: (KH*KW*Cin_pad, bb*Ho*Wp_im)  im2col scratch (compute dtype)
    """
    cinp = stage_ref.shape[0]
    l_row = ho * wp_im

    # One memset establishes every zero: spatial padding, extra lane columns,
    # the padded cin rows, and the KW-1 slack at the end. Data rows below are
    # fully overwritten per batch element, so the zeros persist across b.
    stage_ref[...] = jnp.zeros_like(stage_ref)

    for b in range(bb):
        xb = x_ref[b]                                    # (Cin, H, W) value
        # In-kernel zero padding: place each image row into the row-flattened,
        # padded staging buffer (no wrapper-side jnp.pad / reshape / cast).
        for r in range(h):
            dst = (r + pad) * wp_im + pad
            stage_ref[0:cin, dst:dst + w] = xb[:, r, :].astype(stage_ref.dtype)

        # im2col via the row-overlap trick: tap (kh, kw)'s patch is a single
        # contiguous lane slice of the flattened image. Destination rows are
        # full sublane tiles (cin padded) and destination lanes are 128-aligned
        # (l_row % 128 == 0 at this shape), so the stores are unmasked. The
        # cast to the compute dtype happens here.
        for kh in range(kh_sz):
            for kw in range(kw_sz):
                t = kh * kw_sz + kw
                off = kh * wp_im + kw
                patches_ref[t * cinp:(t + 1) * cinp,
                            b * l_row:(b + 1) * l_row] = (
                    stage_ref[:, off:off + l_row].astype(patches_ref.dtype))

    # Single contraction over the merged KH*KW*Cin_pad axis, f32 accumulation.
    acc = jnp.dot(w_ref[...], patches_ref[...],
                  preferred_element_type=jnp.float32)    # (Cout, bb*Ho*Wp_im)

    y = acc * scale_ref[...] + shift_ref[...]            # BatchNorm(eval) + bias
    o_ref[...] = jnp.maximum(y, 0.0).astype(o_ref.dtype) # ReLU


def prepare_conv_bn_params(weight_oihw, bias, bn_gamma, bn_beta, bn_mean, bn_var,
                           *, eps=1e-5, use_bf16=True):
    """Hoisted, once-per-model parameter prep (inference constants).

    Returns (w2, scale2d, shift2d):
      w2:      (Cout, KH*KW*Cin_pad) in the compute dtype, reduction rows
               ordered (kh, kw, cin_pad) to match the kernel's im2col rows.
      scale2d: (Cout, 1) f32 folded BN scale.
      shift2d: (Cout, 1) f32 folded BN shift (includes the conv bias).
    """
    cout, cin, kh, kw = weight_oihw.shape
    compute_dtype = jnp.bfloat16 if use_bf16 else jnp.float32
    sublane = 8 * (4 // jnp.dtype(compute_dtype).itemsize)   # 8 (f32) / 16 (bf16)
    cin_pad = _round_up(cin, sublane)

    w = jnp.pad(weight_oihw, ((0, 0), (0, cin_pad - cin), (0, 0), (0, 0)))
    w2 = jnp.transpose(w, (0, 2, 3, 1)).reshape(cout, kh * kw * cin_pad)
    w2 = w2.astype(compute_dtype)

    inv_std = jax.lax.rsqrt(bn_var + eps)
    scale = bn_gamma * inv_std                                # (Cout,)
    shift = (bias - bn_mean) * scale + bn_beta                # (Cout,)
    return (w2,
            scale.reshape(cout, 1).astype(jnp.float32),
            shift.reshape(cout, 1).astype(jnp.float32))


@functools.partial(jax.jit,
                   static_argnames=("kernel_size", "same_padding", "grid_blocks"))
def conv2d_forward(x_nchw, w2, scale2d, shift2d, *,
                   kernel_size, same_padding=True, grid_blocks=None):
    """Equivalent of Conv2d(..., stride=1, NL='relu', bn=True, bias=True).forward."""
    n, cin, h, w = x_nchw.shape
    cout, ktot_pad = w2.shape
    kh = kw = kernel_size
    cin_pad = ktot_pad // (kh * kw)
    compute_dtype = w2.dtype

    pad = (kernel_size - 1) // 2 if same_padding else 0
    hp, wp = h + 2 * pad, w + 2 * pad
    ho, wo = hp - kh + 1, wp - kw + 1

    # Lane-dense rows: smallest wp_im >= wp with (ho * wp_im) % 128 == 0
    # (18 -> 24 here, so Ho*Wp_im = 384 = 3*128). Fall back to wp if the
    # required widening would be excessive for an odd-shaped input.
    m = 128 // math.gcd(ho, 128)
    wp_im = _round_up(wp, m)
    if wp_im > wp + 32:
        wp_im = wp
    l_row = ho * wp_im
    flat_len = hp * wp_im + (kw - 1)   # slack so the last tap slice stays in-bounds

    # Batch blocking: fold bb batch elements per grid step; keep the grid at
    # most `grid_blocks` (default min(n, 2)) "parallel" steps so both v7x
    # TensorCores are used while per-step overhead stays negligible.
    if grid_blocks is None:
        grid_blocks = min(n, 2)
    grid_blocks = max(1, min(grid_blocks, n))
    bb = -(-n // grid_blocks)
    n_pad = bb * grid_blocks
    if n_pad > n:
        x_nchw = jnp.pad(x_nchw, ((0, n_pad - n), (0, 0), (0, 0), (0, 0)))
    l_blk = bb * l_row

    kernel = functools.partial(
        _conv_bn_relu_kernel,
        bb=bb, cin=cin, h=h, w=w, pad=pad,
        kh_sz=kh, kw_sz=kw, wp_im=wp_im, ho=ho)

    out_full = pl.pallas_call(
        kernel,
        out_shape=jax.ShapeDtypeStruct((grid_blocks, cout, l_blk), x_nchw.dtype),
        grid_spec=pltpu.PrefetchScalarGridSpec(
            num_scalar_prefetch=0,
            grid=(grid_blocks,),
            in_specs=[
                # Raw NCHW activation block — padding/cast happen in-kernel.
                pl.BlockSpec((bb, cin, h, w), lambda g: (g, 0, 0, 0)),
                pl.BlockSpec((cout, ktot_pad), lambda g: (0, 0)),
                pl.BlockSpec((cout, 1), lambda g: (0, 0)),
                pl.BlockSpec((cout, 1), lambda g: (0, 0)),
            ],
            out_specs=pl.BlockSpec((None, cout, l_blk), lambda g: (g, 0, 0)),
            scratch_shapes=[
                pltpu.VMEM((cin_pad, flat_len), x_nchw.dtype),   # padded image staging
                pltpu.VMEM((ktot_pad, l_blk), compute_dtype),    # im2col patches
            ],
        ),
        compiler_params=pltpu.CompilerParams(
            dimension_semantics=("parallel",),   # batch blocks split across TCs (v7x)
            # Working set here is well under 1 MiB; 16 MiB is within every
            # generation's scoped default (v7x: 32 MiB scoped / 64 MiB phys).
            vmem_limit_bytes=16 * 1024 * 1024,
        ),
    )(x_nchw, w2, scale2d, shift2d)

    # Un-fold batch from the lane axis and strip the wrap-around pad columns.
    out = out_full.reshape(grid_blocks, cout, bb, ho, wp_im)
    out = jnp.transpose(out, (0, 2, 1, 3, 4)).reshape(grid_blocks * bb, cout, ho, wp_im)
    return out[:n, :, :, :wo]


def _reference(x_nchw, weight_oihw, bias, bn_gamma, bn_beta, bn_mean, bn_var,
               *, kernel_size, same_padding=True, eps=1e-5):
    pad = (kernel_size - 1) // 2 if same_padding else 0
    y = jax.lax.conv_general_dilated(
        x_nchw, weight_oihw, window_strides=(1, 1),
        padding=((pad, pad), (pad, pad)),
        dimension_numbers=("NCHW", "OIHW", "NCHW"),
    )
    y = y + bias.reshape(1, -1, 1, 1)
    y = (y - bn_mean.reshape(1, -1, 1, 1)) * jax.lax.rsqrt(
        bn_var.reshape(1, -1, 1, 1) + eps) * bn_gamma.reshape(1, -1, 1, 1) \
        + bn_beta.reshape(1, -1, 1, 1)
    return jnp.maximum(y, 0.0)


if __name__ == "__main__":
    # Module config: Conv2d(in_channels=4, out_channels=8, kernel_size=3,
    #                       stride=1, NL='relu', same_padding=True, bn=True, bias=True)
    in_channels, out_channels, kernel_size = 4, 8, 3
    batch, height, width = 2, 16, 16

    key = jax.random.PRNGKey(0)
    k_x, k_w, k_b, k_g, k_be, k_m, k_v = jax.random.split(key, 7)

    x = jax.random.normal(k_x, (batch, in_channels, height, width), jnp.float32)
    weight = 0.1 * jax.random.normal(
        k_w, (out_channels, in_channels, kernel_size, kernel_size), jnp.float32)
    bias = 0.1 * jax.random.normal(k_b, (out_channels,), jnp.float32)

    # Deterministic, non-trivial BatchNorm parameters / running stats.
    bn_gamma = 1.0 + 0.1 * jax.random.normal(k_g, (out_channels,), jnp.float32)
    bn_beta = 0.1 * jax.random.normal(k_be, (out_channels,), jnp.float32)
    bn_mean = 0.1 * jax.random.normal(k_m, (out_channels,), jnp.float32)
    bn_var = jnp.abs(1.0 + 0.1 * jax.random.normal(k_v, (out_channels,), jnp.float32))

    ref = _reference(x, weight, bias, bn_gamma, bn_beta, bn_mean, bn_var,
                     kernel_size=kernel_size, same_padding=True)

    # ---- f32 path (tight tolerance), default 2-way parallel grid ----
    w2_f32, sc_f32, sh_f32 = prepare_conv_bn_params(
        weight, bias, bn_gamma, bn_beta, bn_mean, bn_var, use_bf16=False)
    out_f32 = jax.block_until_ready(conv2d_forward(
        x, w2_f32, sc_f32, sh_f32, kernel_size=kernel_size, same_padding=True))
    assert out_f32.shape == (batch, out_channels, height, width), out_f32.shape
    assert jnp.allclose(out_f32, ref, atol=1e-4, rtol=1e-4), \
        float(jnp.max(jnp.abs(out_f32 - ref)))

    # ---- f32 path with the whole batch folded into ONE grid step / matmul ----
    out_fold = jax.block_until_ready(conv2d_forward(
        x, w2_f32, sc_f32, sh_f32, kernel_size=kernel_size, same_padding=True,
        grid_blocks=1))
    assert out_fold.shape == (batch, out_channels, height, width), out_fold.shape
    assert jnp.allclose(out_fold, ref, atol=1e-4, rtol=1e-4), \
        float(jnp.max(jnp.abs(out_fold - ref)))

    # ---- bf16-MXU path (default on all generations incl. v5e): looser
    # tolerance — expected precision change from bf16 operands, f32 accumulate.
    w2_bf, sc_bf, sh_bf = prepare_conv_bn_params(
        weight, bias, bn_gamma, bn_beta, bn_mean, bn_var, use_bf16=True)
    out_bf16 = jax.block_until_ready(conv2d_forward(
        x, w2_bf, sc_bf, sh_bf, kernel_size=kernel_size, same_padding=True))
    assert out_bf16.shape == (batch, out_channels, height, width), out_bf16.shape
    assert jnp.allclose(out_bf16, ref, atol=5e-2, rtol=5e-2), \
        float(jnp.max(jnp.abs(out_bf16 - ref)))

    print("KERNEL_OK")
</pallas_src>

<mosaic_0001>
module attributes {stable_mosaic.version = 11 : i64} {
  func.func @_conv_bn_relu_kernel(%arg0: i32, %arg1: memref<1x4x16x16xf32, #tpu.memory_space<vmem>>, %arg2: memref<8x72xf32, #tpu.memory_space<vmem>>, %arg3: memref<8x1xf32, #tpu.memory_space<vmem>>, %arg4: memref<8x1xf32, #tpu.memory_space<vmem>>, %arg5: memref<1x8x384xf32, #tpu.memory_space<vmem>>, %arg6: memref<8x434xf32, #tpu.memory_space<vmem>>, %arg7: memref<72x384xf32, #tpu.memory_space<vmem>>) attributes {dimension_semantics = [#tpu.dimension_semantics<parallel>], iteration_bounds = array<i64: 2>, scalar_prefetch = 0 : i64, scratch_operands = 2 : i64, tpu.core_type = #tpu.core_type<tc>, window_params = [{transform_indices = @transform_0, window_bounds = array<i64: 1, 4, 16, 16>}, {pipeline_mode = #tpu.pipeline_mode<synchronous>, transform_indices = @transform_1, window_bounds = array<i64: 8, 72>}, {pipeline_mode = #tpu.pipeline_mode<synchronous>, transform_indices = @transform_2, window_bounds = array<i64: 8, 1>}, {pipeline_mode = #tpu.pipeline_mode<synchronous>, transform_indices = @transform_3, window_bounds = array<i64: 8, 1>}, {transform_indices = @transform_4, window_bounds = array<i64: 1, 8, 384>}]} {
    %cst = arith.constant 0.000000e+00 : f32
    %0 = vector.broadcast %cst : f32 to vector<8x434xf32>
    %c0 = arith.constant 0 : index
    %c0_0 = arith.constant 0 : index
    %1 = vector.load %arg6[%c0, %c0_0] : memref<8x434xf32, #tpu.memory_space<vmem>>, vector<8x434xf32>
    tpu.vector_store %arg6[%c0, %c0_0], %0 {strides = array<i32>} : memref<8x434xf32, #tpu.memory_space<vmem>>, vector<8x434xf32>,
    %c0_1 = arith.constant 0 : index
    %c0_2 = arith.constant 0 : index
    %c0_3 = arith.constant 0 : index
    %c0_4 = arith.constant 0 : index
    %2 = vector.load %arg1[%c0_1, %c0_2, %c0_3, %c0_4] : memref<1x4x16x16xf32, #tpu.memory_space<vmem>>, vector<1x4x16x16xf32>
    %3 = vector.shape_cast %2 : vector<1x4x16x16xf32> to vector<4x16x16xf32>
    %4 = vector.extract_strided_slice %3 {offsets = [0, 0, 0], sizes = [4, 1, 16], strides = [1, 1, 1]} : vector<4x16x16xf32> to vector<4x1x16xf32>
    %5 = vector.shape_cast %4 : vector<4x1x16xf32> to vector<4x16xf32>
    %c0_5 = arith.constant 0 : index
    %c25 = arith.constant 25 : index
    %6 = vector.load %arg6[%c0_5, %c25] : memref<8x434xf32, #tpu.memory_space<vmem>>, vector<4x16xf32>
    tpu.vector_store %arg6[%c0_5, %c25], %5 {strides = array<i32>} : memref<8x434xf32, #tpu.memory_space<vmem>>, vector<4x16xf32>,
    %7 = vector.extract_strided_slice %3 {offsets = [0, 1, 0], sizes = [4, 1, 16], strides = [1, 1, 1]} : vector<4x16x16xf32> to vector<4x1x16xf32>
    %8 = vector.shape_cast %7 : vector<4x1x16xf32> to vector<4x16xf32>
    %c0_6 = arith.constant 0 : index
    %c49 = arith.constant 49 : index
    %9 = vector.load %arg6[%c0_6, %c49] : memref<8x434xf32, #tpu.memory_space<vmem>>, vector<4x16xf32>
    tpu.vector_store %arg6[%c0_6, %c49], %8 {strides = array<i32>} : memref<8x434xf32, #tpu.memory_space<vmem>>, vector<4x16xf32>,
    %10 = vector.extract_strided_slice %3 {offsets = [0, 2, 0], sizes = [4, 1, 16], strides = [1, 1, 1]} : vector<4x16x16xf32> to vector<4x1x16xf32>
    %11 = vector.shape_cast %10 : vector<4x1x16xf32> to vector<4x16xf32>
    %c0_7 = arith.constant 0 : index
    %c73 = arith.constant 73 : index
    %12 = vector.load %arg6[%c0_7, %c73] : memref<8x434xf32, #tpu.memory_space<vmem>>, vector<4x16xf32>
    tpu.vector_store %arg6[%c0_7, %c73], %11 {strides = array<i32>} : memref<8x434xf32, #tpu.memory_space<vmem>>, vector<4x16xf32>,
    %13 = vector.extract_strided_slice %3 {offsets = [0, 3, 0], sizes = [4, 1, 16], strides = [1, 1, 1]} : vector<4x16x16xf32> to vector<4x1x16xf32>
    %14 = vector.shape_cast %13 : vector<4x1x16xf32> to vector<4x16xf32>
    %c0_8 = arith.constant 0 : index
    %c97 = arith.constant 97 : index
    %15 = vector.load %arg6[%c0_8, %c97] : memref<8x434xf32, #tpu.memory_space<vmem>>, vector<4x16xf32>
    tpu.vector_store %arg6[%c0_8, %c97], %14 {strides = array<i32>} : memref<8x434xf32, #tpu.memory_space<vmem>>, vector<4x16xf32>,
    %16 = vector.extract_strided_slice %3 {offsets = [0, 4, 0], sizes = [4, 1, 16], strides = [1, 1, 1]} : vector<4x16x16xf32> to vector<4x1x16xf32>
    %17 = vector.shape_cast %16 : vector<4x1x16xf32> to vector<4x16xf32>
    %c0_9 = arith.constant 0 : index
    %c121 = arith.constant 121 : index
    %18 = vector.load %arg6[%c0_9, %c121] : memref<8x434xf32, #tpu.memory_space<vmem>>, vector<4x16xf32>
    tpu.vector_store %arg6[%c0_9, %c121], %17 {strides = array<i32>} : memref<8x434xf32, #tpu.memory_space<vmem>>, vector<4x16xf32>,
    %19 = vector.extract_strided_slice %3 {offsets = [0, 5, 0], sizes = [4, 1, 16], strides = [1, 1, 1]} : vector<4x16x16xf32> to vector<4x1x16xf32>
    %20 = vector.shape_cast %19 : vector<4x1x16xf32> to vector<4x16xf32>
    %c0_10 = arith.constant 0 : index
    %c145 = arith.constant 145 : index
    %21 = vector.load %arg6[%c0_10, %c145] : memref<8x434xf32, #tpu.memory_space<vmem>>, vector<4x16xf32>
    tpu.vector_store %arg6[%c0_10, %c145], %20 {strides = array<i32>} : memref<8x434xf32, #tpu.memory_space<vmem>>, vector<4x16xf32>,
    %22 = vector.extract_strided_slice %3 {offsets = [0, 6, 0], sizes = [4, 1, 16], strides = [1, 1, 1]} : vector<4x16x16xf32> to vector<4x1x16xf32>
    %23 = vector.shape_cast %22 : vector<4x1x16xf32> to vector<4x16xf32>
    %c0_11 = arith.constant 0 : index
    %c169 = arith.constant 169 : index
    %24 = vector.load %arg6[%c0_11, %c169] : memref<8x434xf32, #tpu.memory_space<vmem>>, vector<4x16xf32>
    tpu.vector_store %arg6[%c0_11, %c169], %23 {strides = array<i32>} : memref<8x434xf32, #tpu.memory_space<vmem>>, vector<4x16xf32>,
    %25 = vector.extract_strided_slice %3 {offsets = [0, 7, 0], sizes = [4, 1, 16], strides = [1, 1, 1]} : vector<4x16x16xf32> to vector<4x1x16xf32>
    %26 = vector.shape_cast %25 : vector<4x1x16xf32> to vector<4x16xf32>
    %c0_12 = arith.constant 0 : index
    %c193 = arith.constant 193 : index
    %27 = vector.load %arg6[%c0_12, %c193] : memref<8x434xf32, #tpu.memory_space<vmem>>, vector<4x16xf32>
    tpu.vector_store %arg6[%c0_12, %c193], %26 {strides = array<i32>} : memref<8x434xf32, #tpu.memory_space<vmem>>, vector<4x16xf32>,
    %28 = vector.extract_strided_slice %3 {offsets = [0, 8, 0], sizes = [4, 1, 16], strides = [1, 1, 1]} : vector<4x16x16xf32> to vector<4x1x16xf32>
    %29 = vector.shape_cast %28 : vector<4x1x16xf32> to vector<4x16xf32>
    %c0_13 = arith.constant 0 : index
    %c217 = arith.constant 217 : index
    %30 = vector.load %arg6[%c0_13, %c217] : memref<8x434xf32, #tpu.memory_space<vmem>>, vector<4x16xf32>
    tpu.vector_store %arg6[%c0_13, %c217], %29 {strides = array<i32>} : memref<8x434xf32, #tpu.memory_space<vmem>>, vector<4x16xf32>,
    %31 = vector.extract_strided_slice %3 {offsets = [0, 9, 0], sizes = [4, 1, 16], strides = [1, 1, 1]} : vector<4x16x16xf32> to vector<4x1x16xf32>
    %32 = vector.shape_cast %31 : vector<4x1x16xf32> to vector<4x16xf32>
    %c0_14 = arith.constant 0 : index
    %c241 = arith.constant 241 : index
    %33 = vector.load %arg6[%c0_14, %c241] : memref<8x434xf32, #tpu.memory_space<vmem>>, vector<4x16xf32>
    tpu.vector_store %arg6[%c0_14, %c241], %32 {strides = array<i32>} : memref<8x434xf32, #tpu.memory_space<vmem>>, vector<4x16xf32>,
    %34 = vector.extract_strided_slice %3 {offsets = [0, 10, 0], sizes = [4, 1, 16], strides = [1, 1, 1]} : vector<4x16x16xf32> to vector<4x1x16xf32>
    %35 = vector.shape_cast %34 : vector<4x1x16xf32> to vector<4x16xf32>
    %c0_15 = arith.constant 0 : index
    %c265 = arith.constant 265 : index
    %36 = vector.load %arg6[%c0_15, %c265] : memref<8x434xf32, #tpu.memory_space<vmem>>, vector<4x16xf32>
    tpu.vector_store %arg6[%c0_15, %c265], %35 {strides = array<i32>} : memref<8x434xf32, #tpu.memory_space<vmem>>, vector<4x16xf32>,
    %37 = vector.extract_strided_slice %3 {offsets = [0, 11, 0], sizes = [4, 1, 16], strides = [1, 1, 1]} : vector<4x16x16xf32> to vector<4x1x16xf32>
    %38 = vector.shape_cast %37 : vector<4x1x16xf32> to vector<4x16xf32>
    %c0_16 = arith.constant 0 : index
    %c289 = arith.constant 289 : index
    %39 = vector.load %arg6[%c0_16, %c289] : memref<8x434xf32, #tpu.memory_space<vmem>>, vector<4x16xf32>
    tpu.vector_store %arg6[%c0_16, %c289], %38 {strides = array<i32>} : memref<8x434xf32, #tpu.memory_space<vmem>>, vector<4x16xf32>,
    %40 = vector.extract_strided_slice %3 {offsets = [0, 12, 0], sizes = [4, 1, 16], strides = [1, 1, 1]} : vector<4x16x16xf32> to vector<4x1x16xf32>
    %41 = vector.shape_cast %40 : vector<4x1x16xf32> to vector<4x16xf32>
    %c0_17 = arith.constant 0 : index
    %c313 = arith.constant 313 : index
    %42 = vector.load %arg6[%c0_17, %c313] : memref<8x434xf32, #tpu.memory_space<vmem>>, vector<4x16xf32>
    tpu.vector_store %arg6[%c0_17, %c313], %41 {strides = array<i32>} : memref<8x434xf32, #tpu.memory_space<vmem>>, vector<4x16xf32>,
    %43 = vector.extract_strided_slice %3 {offsets = [0, 13, 0], sizes = [4, 1, 16], strides = [1, 1, 1]} : vector<4x16x16xf32> to vector<4x1x16xf32>
    %44 = vector.shape_cast %43 : vector<4x1x16xf32> to vector<4x16xf32>
    %c0_18 = arith.constant 0 : index
    %c337 = arith.constant 337 : index
    %45 = vector.load %arg6[%c0_18, %c337] : memref<8x434xf32, #tpu.memory_space<vmem>>, vector<4x16xf32>
    tpu.vector_store %arg6[%c0_18, %c337], %44 {strides = array<i32>} : memref<8x434xf32, #tpu.memory_space<vmem>>, vector<4x16xf32>,
    %46 = vector.extract_strided_slice %3 {offsets = [0, 14, 0], sizes = [4, 1, 16], strides = [1, 1, 1]} : vector<4x16x16xf32> to vector<4x1x16xf32>
    %47 = vector.shape_cast %46 : vector<4x1x16xf32> to vector<4x16xf32>
    %c0_19 = arith.constant 0 : index
    %c361 = arith.constant 361 : index
    %48 = vector.load %arg6[%c0_19, %c361] : memref<8x434xf32, #tpu.memory_space<vmem>>, vector<4x16xf32>
    tpu.vector_store %arg6[%c0_19, %c361], %47 {strides = array<i32>} : memref<8x434xf32, #tpu.memory_space<vmem>>, vector<4x16xf32>,
    %49 = vector.extract_strided_slice %3 {offsets = [0, 15, 0], sizes = [4, 1, 16], strides = [1, 1, 1]} : vector<4x16x16xf32> to vector<4x1x16xf32>
    %50 = vector.shape_cast %49 : vector<4x1x16xf32> to vector<4x16xf32>
    %c0_20 = arith.constant 0 : index
    %c385 = arith.constant 385 : index
    %51 = vector.load %arg6[%c0_20, %c385] : memref<8x434xf32, #tpu.memory_space<vmem>>, vector<4x16xf32>
    tpu.vector_store %arg6[%c0_20, %c385], %50 {strides = array<i32>} : memref<8x434xf32, #tpu.memory_space<vmem>>, vector<4x16xf32>,
    %c0_21 = arith.constant 0 : index
    %c0_22 = arith.constant 0 : index
    %52 = vector.load %arg6[%c0_21, %c0_22] : memref<8x434xf32, #tpu.memory_space<vmem>>, vector<8x384xf32>
    %c0_23 = arith.constant 0 : index
    %c0_24 = arith.constant 0 : index
    %53 = vector.load %arg7[%c0_23, %c0_24] : memref<72x384xf32, #tpu.memory_space<vmem>>, vector<8x384xf32>
    tpu.vector_store %arg7[%c0_23, %c0_24], %52 {strides = array<i32>} : memref<72x384xf32, #tpu.memory_space<vmem>>, vector<8x384xf32>,
    %c0_25 = arith.constant 0 : index
    %c1 = arith.constant 1 : index
    %54 = vector.load %arg6[%c0_25, %c1] : memref<8x434xf32, #tpu.memory_space<vmem>>, vector<8x384xf32>
    %c8 = arith.constant 8 : index
    %c0_26 = arith.constant 0 : index
    %55 = vector.load %arg7[%c8, %c0_26] : memref<72x384xf32, #tpu.memory_space<vmem>>, vector<8x384xf32>
    tpu.vector_store %arg7[%c8, %c0_26], %54 {strides = array<i32>} : memref<72x384xf32, #tpu.memory_space<vmem>>, vector<8x384xf32>,
    %c0_27 = arith.constant 0 : index
    %c2 = arith.constant 2 : index
    %56 = vector.load %arg6[%c0_27, %c2] : memref<8x434xf32, #tpu.memory_space<vmem>>, vector<8x384xf32>
    %c16 = arith.constant 16 : index
    %c0_28 = arith.constant 0 : index
    %57 = vector.load %arg7[%c16, %c0_28] : memref<72x384xf32, #tpu.memory_space<vmem>>, vector<8x384xf32>
    tpu.vector_store %arg7[%c16, %c0_28], %56 {strides = array<i32>} : memref<72x384xf32, #tpu.memory_space<vmem>>, vector<8x384xf32>,
    %c0_29 = arith.constant 0 : index
    %c24 = arith.constant 24 : index
    %58 = vector.load %arg6[%c0_29, %c24] : memref<8x434xf32, #tpu.memory_space<vmem>>, vector<8x384xf32>
    %c24_30 = arith.constant 24 : index
    %c0_31 = arith.constant 0 : index
    %59 = vector.load %arg7[%c24_30, %c0_31] : memref<72x384xf32, #tpu.memory_space<vmem>>, vector<8x384xf32>
    tpu.vector_store %arg7[%c24_30, %c0_31], %58 {strides = array<i32>} : memref<72x384xf32, #tpu.memory_space<vmem>>, vector<8x384xf32>,
    %c0_32 = arith.constant 0 : index
    %c25_33 = arith.constant 25 : index
    %60 = vector.load %arg6[%c0_32, %c25_33] : memref<8x434xf32, #tpu.memory_space<vmem>>, vector<8x384xf32>
    %c32 = arith.constant 32 : index
    %c0_34 = arith.constant 0 : index
    %61 = vector.load %arg7[%c32, %c0_34] : memref<72x384xf32, #tpu.memory_space<vmem>>, vector<8x384xf32>
    tpu.vector_store %arg7[%c32, %c0_34], %60 {strides = array<i32>} : memref<72x384xf32, #tpu.memory_space<vmem>>, vector<8x384xf32>,
    %c0_35 = arith.constant 0 : index
    %c26 = arith.constant 26 : index
    %62 = vector.load %arg6[%c0_35, %c26] : memref<8x434xf32, #tpu.memory_space<vmem>>, vector<8x384xf32>
    %c40 = arith.constant 40 : index
    %c0_36 = arith.constant 0 : index
    %63 = vector.load %arg7[%c40, %c0_36] : memref<72x384xf32, #tpu.memory_space<vmem>>, vector<8x384xf32>
    tpu.vector_store %arg7[%c40, %c0_36], %62 {strides = array<i32>} : memref<72x384xf32, #tpu.memory_space<vmem>>, vector<8x384xf32>,
    %c0_37 = arith.constant 0 : index
    %c48 = arith.constant 48 : index
    %64 = vector.load %arg6[%c0_37, %c48] : memref<8x434xf32, #tpu.memory_space<vmem>>, vector<8x384xf32>
    %c48_38 = arith.constant 48 : index
    %c0_39 = arith.constant 0 : index
    %65 = vector.load %arg7[%c48_38, %c0_39] : memref<72x384xf32, #tpu.memory_space<vmem>>, vector<8x384xf32>
    tpu.vector_store %arg7[%c48_38, %c0_39], %64 {strides = array<i32>} : memref<72x384xf32, #tpu.memory_space<vmem>>, vector<8x384xf32>,
    %c0_40 = arith.constant 0 : index
    %c49_41 = arith.constant 49 : index
    %66 = vector.load %arg6[%c0_40, %c49_41] : memref<8x434xf32, #tpu.memory_space<vmem>>, vector<8x384xf32>
    %c56 = arith.constant 56 : index
    %c0_42 = arith.constant 0 : index
    %67 = vector.load %arg7[%c56, %c0_42] : memref<72x384xf32, #tpu.memory_space<vmem>>, vector<8x384xf32>
    tpu.vector_store %arg7[%c56, %c0_42], %66 {strides = array<i32>} : memref<72x384xf32, #tpu.memory_space<vmem>>, vector<8x384xf32>,
    %c0_43 = arith.constant 0 : index
    %c50 = arith.constant 50 : index
    %68 = vector.load %arg6[%c0_43, %c50] : memref<8x434xf32, #tpu.memory_space<vmem>>, vector<8x384xf32>
    %c64 = arith.constant 64 : index
    %c0_44 = arith.constant 0 : index
    %69 = vector.load %arg7[%c64, %c0_44] : memref<72x384xf32, #tpu.memory_space<vmem>>, vector<8x384xf32>
    tpu.vector_store %arg7[%c64, %c0_44], %68 {strides = array<i32>} : memref<72x384xf32, #tpu.memory_space<vmem>>, vector<8x384xf32>,
    %c0_45 = arith.constant 0 : index
    %c0_46 = arith.constant 0 : index
    %70 = vector.load %arg2[%c0_45, %c0_46] : memref<8x72xf32, #tpu.memory_space<vmem>>, vector<8x72xf32>
    %c0_47 = arith.constant 0 : index
    %c0_48 = arith.constant 0 : index
    %71 = vector.load %arg7[%c0_47, %c0_48] : memref<72x384xf32, #tpu.memory_space<vmem>>, vector<72x384xf32>
    %cst_49 = arith.constant dense<0.000000e+00> : vector<8x384xf32>
    %72 = tpu.matmul %70, %71, %cst_49 {dimension_numbers = #tpu.dot_dimension_numbers<[1], [0], [0], [1], [0, 0, 1, 1], [], []>} : vector<8x72xf32>, vector<72x384xf32>, vector<8x384xf32> -> vector<8x384xf32>
    %c0_50 = arith.constant 0 : index
    %c0_51 = arith.constant 0 : index
    %73 = vector.load %arg3[%c0_50, %c0_51] : memref<8x1xf32, #tpu.memory_space<vmem>>, vector<8x1xf32>
    %74 = vector.broadcast %73 : vector<8x1xf32> to vector<8x384xf32>
    %75 = arith.mulf %72, %74 : vector<8x384xf32>
    %c0_52 = arith.constant 0 : index
    %c0_53 = arith.constant 0 : index
    %76 = vector.load %arg4[%c0_52, %c0_53] : memref<8x1xf32, #tpu.memory_space<vmem>>, vector<8x1xf32>
    %77 = vector.broadcast %76 : vector<8x1xf32> to vector<8x384xf32>
    %78 = arith.addf %75, %77 : vector<8x384xf32>
    %cst_54 = arith.constant 0.000000e+00 : f32
    %79 = vector.broadcast %cst_54 : f32 to vector<8x384xf32>
    %80 = arith.maximumf %78, %79 : vector<8x384xf32>
    %c0_55 = arith.constant 0 : index
    %c0_56 = arith.constant 0 : index
    %c0_57 = arith.constant 0 : index
    %81 = vector.load %arg5[%c0_55, %c0_56, %c0_57] : memref<1x8x384xf32, #tpu.memory_space<vmem>>, vector<1x8x384xf32>
    %82 = vector.shape_cast %81 : vector<1x8x384xf32> to vector<8x384xf32>
    %83 = vector.shape_cast %80 : vector<8x384xf32> to vector<1x8x384xf32>
    tpu.vector_store %arg5[%c0_55, %c0_56, %c0_57], %83 {strides = array<i32>} : memref<1x8x384xf32, #tpu.memory_space<vmem>>, vector<1x8x384xf32>,
    return
  }
  func.func @transform_0(%arg0: i32) -> (i32, i32, i32, i32) {
    %c0_i32 = arith.constant 0 : i32
    %c0_i32_0 = arith.constant 0 : i32
    %c0_i32_1 = arith.constant 0 : i32
    %c0_i32_2 = arith.constant 0 : i32
    return %arg0, %c0_i32, %c0_i32_0, %c0_i32_1 : i32, i32, i32, i32
  }
  func.func @transform_1(%arg0: i32) -> (i32, i32) {
    %c0_i32 = arith.constant 0 : i32
    %c0_i32_0 = arith.constant 0 : i32
    %c0_i32_1 = arith.constant 0 : i32
    return %c0_i32, %c0_i32_0 : i32, i32
  }
  func.func @transform_2(%arg0: i32) -> (i32, i32) {
    %c0_i32 = arith.constant 0 : i32
    %c0_i32_0 = arith.constant 0 : i32
    %c0_i32_1 = arith.constant 0 : i32
    return %c0_i32, %c0_i32_0 : i32, i32
  }
  func.func @transform_3(%arg0: i32) -> (i32, i32) {
    %c0_i32 = arith.constant 0 : i32
    %c0_i32_0 = arith.constant 0 : i32
    %c0_i32_1 = arith.constant 0 : i32
    return %c0_i32, %c0_i32_0 : i32, i32
  }
  func.func @transform_4(%arg0: i32) -> (i32, i32, i32) {
    %c0_i32 = arith.constant 0 : i32
    %c0_i32_0 = arith.constant 0 : i32
    %c0_i32_1 = arith.constant 0 : i32
    return %arg0, %c0_i32, %c0_i32_0 : i32, i32, i32
  }
}

</mosaic_0001>

<bundles_post_ra>
// kernel: conv2d_forward.1
= control target key start
LH: loop header
LB: loop body
LE: loop exit
PB: predicated region body
PF: predicated region fallthrough
CT: control target
= control target key end

     0   :  { %9 = vsyncpa [#allocation5], 0  ;;  %s1448_s0 = inlined_call_operand.hbm [shape: f32[2,4,16,16], index: 0, kind: input, shape index: {}]   ;;  %s1449_s1 = inlined_call_operand.vmem [shape: f32[8,72], index: 1, kind: input, shape index: {}]   ;;  %s1450_s2 = inlined_call_operand.vmem [shape: f32[8,1], index: 2, kind: input, shape index: {}]   ;;  %s1451_s3 = inlined_call_operand.vmem [shape: f32[8,1], index: 3, kind: input, shape index: {}]   ;;  %s1452_s4 = inlined_call_operand.vmem [shape: f32[2,8,384], index: 4, kind: output, shape index: {}]  }
   0x1   :  { %11 = vsyncpa [#allocation5 + $0x1], 0  ;;  %s1143_s15 = smov 0   ;;  %s1145_s16 = smov 0  }
   0x2   :  { %s1147_s17 = smov 0   ;;  %s1149_s18 = smov 0  }
   0x3 LB: > { %s1162_s19 = sadd.s32 4294967295, %s1086_s18   ;;  %s1165_s20 = sadd.s32 1, %s1086_s18   ;;  %s1086_s18 = sphi %s1149_s18, %s1461_s18   ;;  %s1082_s17 = sphi %s1147_s17, %s1460_s17   ;;  %s1078_s16 = sphi %s1145_s16, %s1459_s16   ;;  %s1074_s15 = sphi %s1143_s15, %s1458_s15  }
   0x4   : > { %s21_s21 = ssub.s32 %s1086_s18, %s1165_s20  ;;  %s24_s22 = sadd.s32 1, %s1082_s17 }
   0x5   : > { %p22_p0 = scmp.eq.s32.totalorder %s21_s21, 0  ;;  %p31_p1 = scmp.ne.s32.totalorder %s1082_s17, %s1078_s16 }
   0x6   : > { %p32_p2 = scmp.eq.s32.totalorder %s1086_s18, 0  ;;  %p37_p3 = scmp.ne.s32.totalorder %s1078_s16, %s1074_s15 }
   0x7   : > { %s1175_s23 = scalar_select %p22_p0, %s1082_s17, %s24_s22  }
   0x8   : > { %p33_p4 = por %p32_p2, %p31_p1  ;;  %p38_p5 = scmp.eq.s32.totalorder %s1162_s19, 0 }
   0x9   : > { %p960_p6 = scmp.lt.s32.totalorder %s1086_s18, 2  ;;  %s159_s25 = sand.u32 1, %s1082_s17  }
   0xa   : > { %p1179_p7 = por %p38_p5, %p37_p3  ;;  %s911_s26 = sshll.u32 %s159_s25, 6 }
   0xb   : > { %s921_s27 = sshll.u32 %s1086_s18, 10  ;;  %s163_s5 = scalar_lea.vmem [#allocation4], %s911_s26 }
   0xc   : > { %s1454_s24 = scalar_select %p1179_p7, 1, 0 }
   0xd   : > { %s1188_s30 = scalar_lea.hbm %s1448_s0, %s921_s27  ;;  %s170_s6 = sshll.u32 %s163_s5, 4  ;;  %s1190_s6 = int_to_ptr.vmem [resolvable:$true] %s170_s6 }
   0xe   : > { %p1192_p8 = pnand %p960_p6, %p33_p4  ;;  %s1197_s8 = scalar_lea.sflag [#allocation5], %s159_s25 }
   0xf   : > { %s1024_s9 = scalar_lea.hbm %s1188_s30, 1024  ;;  %s1029_s12 = scalar_lea.hbm %s1448_s0, 2048 }
  0x10   : > { %p1025_p10 = scmp.ne.s32.totalorder %s1188_s30, %s1024_s9  ;;  %p1026_p11 = pneg %p1192_p8 }
  0x11   : > { %p1030_p0 = scmp.lt.s32.totalorder %s1188_s30, %s1448_s0  ;;  %p1031_p1 = scmp.lt.s32.totalorder %s1029_s12, %s1024_s9 }
  0x12   : > { %p1027_p12 = pnand %p1026_p11, %p1025_p10 }
  0x13   : > { %p1032_p2 = por %p1031_p1, %p1030_p0 }
  0x14   : > { %p1028_p13 = pneg %p1027_p12 }
  0x16   : > { %p1033_p3 = pnand %p1032_p2, %p1028_p13 }
  0x18   : > { %1036 = shalt.err (!%p1033_p3)
}
  0x19   : > { %s1037_s15 = scalar_lea.vmem %s1190_s6, 1024  ;;  %s1088_s21 = smov [#allocation4]  }
  0x1a   : > { %p1038_p4 = scmp.ne.s32.totalorder %s1190_s6, %s1037_s15  ;;  %s1042_s22 = sshll.u32 %s1088_s21, 4  ;;  %s1043_s22 = int_to_ptr.vmem [resolvable:$false] %s1042_s22 }
  0x1b   : > { %s1044_s25 = scalar_lea.vmem %s1043_s22, 2048  ;;  %p1045_p10 = scmp.lt.s32.totalorder %s1190_s6, %s1043_s22 }
  0x1c   : > { %p1040_p5 = pnand %p1038_p4, %p1026_p11  ;;  %p1046_p12 = scmp.lt.s32.totalorder %s1044_s25, %s1037_s15 }
  0x1e   : > { %p1041_p6 = pneg %p1040_p5  ;;  %p1047_p9 = por %p1046_p12, %p1045_p10 }
  0x20   : > { %p1048_p7 = pnand %p1047_p9, %p1041_p6 }
  0x22   : > { %1051 = shalt.err (!%p1048_p7)
}
  0x23   : > { %s1089_s26 = smov 128   ;;  %s1090_s27 = smov 8  }
  0x24   : > { %959 = dma.hbm_to_vmem [thread:$0]  (!%p1192_p8), %s1188_s30, 1024, %s1190_s6, %s1197_s8, %s1089_s26, %s1089_s26, %s1090_s27  }
  0x25   : > { %p178_p11 = scmp.lt.s32.totalorder %s1086_s18, 3  ;;  %p1456_p13 = scmp.ge.s32.totalorder %s1086_s18, 1 }
  0x27   : > { %p179_p0 = pnand %p1456_p13, %p178_p11 }
  0x28   : > { %s184_s28 = sand.u32 (!%p179_p0), 1, %s1078_s16   ;;  %p1457_p7 = scmp.ne.s32.totalorder (!%p179_p0), %s1454_s24, 0 }
  0x29   : > { %182 = sbr.rel (%p179_p0) target bundleno = 586 (0x24a), region = 36  ;;  %s915_s29 = sshll.u32 (!%p179_p0), %s184_s28, 6 }
  0x2a   : > { %s185_s5 = scalar_lea.sflag (!%p179_p0), [#allocation5], %s184_s28  ;;  %s188_s9 = scalar_lea.vmem (!%p179_p0), [#allocation4], %s915_s29 }
  0x2e   : > { %1069 = dma.done.wait (%p1457_p7), %s185_s5, 1024  }
  0x2f   : > { %1071 = vsyncadd (%p1457_p7), %s185_s5, 4294966272  ;;  %v1091_v0 = vmov 0.0   ;;  %v1231_v1 = vld [vmem:[%s188_s9] sm:$0xff]  ;;  %v1233_v2 = vld [vmem:[%s188_s9 + $0x10] sm:$0xff]  ;;  %vm236_vm0 = vcmask 1041409   ;;  %vm239_vm1 = vcmask 1042434  }
  0x30   : > { %219 = vst [vmem:[#allocation2 + $0x8] sm:$0xff] %v1091_v0  ;;  %218 = vst [vmem:[#allocation2] sm:$0xff] %v1091_v0  ;;  %932 = vmatprep.subr.mxu1 %v1091_v0  ;;  %740 = vmatprep.mubr.f32.mxu0 %v1091_v0  ;;  %v1235_v3 = vld [vmem:[%s188_s9 + $0x20] sm:$0xff]  ;;  %vm242_vm2 = vcmask 1043459   ;;  %v1237_v4 = vld [vmem:[%s188_s9 + $0x30] sm:$0xff]  ;;  %v296_v5 = vrot.slane %v1231_v1, 5 }
  0x31   : > { %220 = vst [vmem:[#allocation2 + $0x10] sm:$0xff] %v1091_v0  ;;  %v297_v6 = vrot.slane %v1233_v2, 4  ;;  %v299_v7 = vrot.slane %v1235_v3, 3  ;;  %v282_v8 = vrot.slane %v1231_v1, 4  ;;  %v1243_v9 = vld [vmem:[%s188_s9 + $0x8] sm:$0xff]  ;;  %v301_v10 = vrot.slane %v1237_v4, 2 }
  0x32   : > { %v283_v11 = vrot.slane %v1233_v2, 3  ;;  %v285_v12 = vrot.slane %v1235_v3, 2  ;;  %v287_v13 = vrot.slane %v1237_v4, 1  ;;  %v1249_v14 = vld [vmem:[%s188_s9 + $0x18] sm:$0xff]  ;;  %v1251_v15 = vld [vmem:[%s188_s9 + $0x28] sm:$0xff]  ;;  %v360_v18 = vrot.slane %v1243_v9, 2 }
  0x33   : > { %v298_v16 = vsel %vm236_vm0, %v297_v6, %v296_v5  ;;  %v1254_v17 = vld [vmem:[%s188_s9 + $0x38] sm:$0xff]  ;;  %v361_v19 = vrot.slane %v1249_v14, 1  ;;  %v347_v20 = vrot.slane %v1243_v9, 1  ;;  %v349_v24 = vrot.slane %v1251_v15, 7  ;;  %s1092_s18 = smov 17   ;;  %s1093_s24 = smov 121  }
  0x34   : > { %v300_v21 = vsel %vm239_vm1, %v299_v7, %v298_v16  ;;  %v284_v22 = vsel %vm236_vm0, %v283_v11, %v282_v8  ;;  %v364_v23 = vrot.slane %v1254_v17, 7  ;;  %v351_v32 = vrot.slane %v1254_v17, 6  ;;  %s1094_s30 = smov 9   ;;  %s1095_s6 = smov 113  }
  0x35   : > { %v302_v25 = vsel %vm242_vm2, %v301_v10, %v300_v21  ;;  %v286_v26 = vsel %vm239_vm1, %v285_v12, %v284_v22  ;;  %v362_v27 = vsel %vm236_vm0, %v361_v19, %v360_v18  ;;  %v348_v28 = vsel %vm236_vm0, %v1249_v14, %v347_v20  ;;  %s1096_s7 = smov 41   ;;  %s1097_s8 = smov 25  }
  0x36   : > { %303 = vrot.lane.b32.xlu1 %v302_v25, %s1092_s18  ;;  %v288_v29 = vsel %vm242_vm2, %v287_v13, %v286_v26  ;;  %v363_v30 = vsel %vm239_vm1, %v1251_v15, %v362_v27  ;;  %v350_v31 = vsel %vm239_vm1, %v349_v24, %v348_v28  ;;  %v308_v34 = vrot.slane %v1231_v1, 6  ;;  %s1098_s10 = smov 49   ;;  %s1099_s11 = smov 33  }
  0x37   : > { %289 = vrot.lane.b32.xlu0 %v288_v29, %s1093_s24  ;;  %v365_v33 = vsel %vm242_vm2, %v364_v23, %v363_v30  ;;  %v309_v35 = vrot.slane %v1233_v2, 5  ;;  %v311_v36 = vrot.slane %v1235_v3, 4  ;;  %v352_v37 = vsel %vm242_vm2, %v351_v32, %v350_v31  ;;  %s1100_s12 = smov 57   ;;  %s1101_s13 = smov 65  }
  0x38   : > { %v313_v38 = vrot.slane %v1237_v4, 3  ;;  %v235_v39 = vrot.slane %v1233_v2, 7  ;;  %v238_v40 = vrot.slane %v1235_v3, 6  ;;  %v241_v42 = vrot.slane %v1237_v4, 5  ;;  %s1102_s14 = smov 89   ;;  %s1103_s15 = smov 73  }
  0x39   : > { %v310_v41 = vsel %vm236_vm0, %v309_v35, %v308_v34  ;;  %v249_v43 = vrot.slane %v1231_v1, 1  ;;  %v251_v44 = vrot.slane %v1235_v3, 7  ;;  %v253_v47 = vrot.slane %v1237_v4, 6  ;;  %s1104_s21 = smov 97   ;;  %s1105_s22 = smov 81  }
  0x3a   : > { %366 = vrot.lane.b32.xlu1 %v365_v33, %s1094_s30  ;;  %v312_v45 = vsel %vm239_vm1, %v311_v36, %v310_v41  ;;  %v237_v46 = vsel %vm236_vm0, %v235_v39, %v1231_v1  ;;  %v371_v48 = vrot.slane %v1243_v9, 3  ;;  %v372_v52 = vrot.slane %v1249_v14, 2  ;;  %s1106_s25 = smov 1   ;;  %s1107_s26 = smov 105  }
  0x3b   : > { %353 = vrot.lane.b32.xlu0 %v352_v37, %s1095_s6  ;;  %v314_v49 = vsel %vm242_vm2, %v313_v38, %v312_v45  ;;  %v240_v50 = vsel %vm239_vm1, %v238_v40, %v237_v46  ;;  %v250_v51 = vsel %vm236_vm0, %v1233_v2, %v249_v43  ;;  %v374_v55 = vrot.slane %v1251_v15, 1  ;;  %s1108_s27 = smov 79   ;;  %s1109_s28 = smov 78  }
  0x3c   : > { %v243_v53 = vsel %vm242_vm2, %v241_v42, %v240_v50  ;;  %v252_v54 = vsel %vm239_vm1, %v251_v44, %v250_v51  ;;  %v382_v56 = vrot.slane %v1243_v9, 4  ;;  %v373_v58 = vsel %vm236_vm0, %v372_v52, %v371_v48  ;;  %s1110_s29 = smov 80   ;;  %s1111_s5 = smov 102  }
  0x3d   : > { %v254_v57 = vsel %vm242_vm2, %v253_v47, %v252_v54  ;;  %v383_v59 = vrot.slane %v1249_v14, 3  ;;  %v385_v60 = vrot.slane %v1251_v15, 2  ;;  %v375_v61 = vsel %vm239_vm1, %v374_v55, %v373_v58  ;;  %s1112_s9 = smov 103   ;;  %s1113_s18 = smov 104  }
  0x3e   : > { %315 = vrot.lane.b32.xlu1 %v314_v49, %s1096_s7  ;;  %v387_v62 = vrot.slane %v1254_v17, 1  ;;  %v320_v63 = vrot.slane %v1231_v1, 7  ;;  %v321_v5 = vrot.slane %v1233_v2, 6  ;;  %v376_v6 = vsel %vm242_vm2, %v1254_v17, %v375_v61  ;;  %s1114_s24 = smov 126   ;;  %s1115_s30 = smov 127  }
  0x3f   : > { %244 = vrot.lane.b32.xlu0 %v243_v53, %s1097_s8  ;;  %v384_v7 = vsel %vm236_vm0, %v383_v59, %v382_v56  ;;  %v323_v8 = vrot.slane %v1235_v3, 5  ;;  %v325_v10 = vrot.slane %v1237_v4, 4  ;;  %v336_v13 = vrot.slane %v1249_v14, 7  ;;  %p213_p8 = scmp.lt.s32.totalorder %s1162_s19, 1 }
  0x40   : > { %v386_v11 = vsel %vm239_vm1, %v385_v60, %v384_v7  ;;  %v322_v12 = vsel %vm236_vm0, %v321_v5, %v320_v63  ;;  %v338_v16 = vrot.slane %v1251_v15, 6  ;;  %v260_v19 = vrot.slane %v1231_v1, 2 }
  0x41   : > { %v324_v18 = vsel %vm239_vm1, %v323_v8, %v322_v12  ;;  %v388_v20 = vsel %vm242_vm2, %v387_v62, %v386_v11  ;;  %v337_v21 = vsel %vm236_vm0, %v336_v13, %v1243_v9  ;;  %v340_v22 = vrot.slane %v1254_v17, 5  ;;  %v826_v13 = vld [vmem:[%s1451_s3] sm:$0xff]  ;;  %s1463_s19 = smov (!%p213_p8, %s1162_s19), 1 }
  0x42   : > { %255 = vrot.lane.b32.xlu1 %v254_v57, %s1098_s10  ;;  %v261_v23 = vrot.slane %v1233_v2, 1  ;;  %v339_v24 = vsel %vm239_vm1, %v338_v16, %v337_v21  ;;  %v264_v25 = vrot.slane %v1237_v4, 7  ;;  %v271_v26 = vrot.slane %v1231_v1, 3  ;;  %v817_v16 = vld [vmem:[%s1450_s2] sm:$0xff] }
  0x43   : > { %377 = vrot.lane.b32.xlu0 %v376_v6, %s1099_s11  ;;  %v272_v27 = vrot.slane %v1233_v2, 2  ;;  %v326_v28 = vsel %vm242_vm2, %v325_v10, %v324_v18  ;;  %v274_v30 = vrot.slane %v1235_v3, 1  ;;  %v418_v33 = vrot.slane %v1243_v9, 7 }
  0x44   : > { %v262_v29 = vsel %vm236_vm0, %v261_v23, %v260_v19  ;;  %v419_v34 = vrot.slane %v1249_v14, 6  ;;  %v341_v1 = vsel %vm242_vm2, %v340_v22, %v339_v24  ;;  %v394_v2 = vrot.slane %v1243_v9, 5 }
  0x45   : > { %v263_v31 = vsel %vm239_vm1, %v1235_v3, %v262_v29  ;;  %v273_v32 = vsel %vm236_vm0, %v272_v27, %v271_v26  ;;  %v421_v36 = vrot.slane %v1251_v15, 5  ;;  %v395_v3 = vrot.slane %v1249_v14, 4 }
  0x46   : > { %389 = vrot.lane.b32.xlu1 %v388_v20, %s1100_s12  ;;  %v265_v35 = vsel %vm242_vm2, %v264_v25, %v263_v31  ;;  %v397_v37 = vrot.slane %v1251_v15, 3  ;;  %v275_v38 = vsel %vm239_vm1, %v274_v30, %v273_v32  ;;  %v399_v39 = vrot.slane %v1254_v17, 2 }
  0x47   : > { %327 = vrot.lane.b32.xlu0 %v326_v28, %s1101_s13  ;;  %v406_v40 = vrot.slane %v1243_v9, 6  ;;  %v407_v41 = vrot.slane %v1249_v14, 5  ;;  %v420_v42 = vsel %vm236_vm0, %v419_v34, %v418_v33  ;;  %v396_v43 = vsel %vm236_vm0, %v395_v3, %v394_v2  ;;  %s953_s13 = smul.u32 24, %s1463_s19 }
  0x48   : > { %v409_v44 = vrot.slane %v1251_v15, 4  ;;  %v398_v45 = vsel %vm239_vm1, %v397_v37, %v396_v43  ;;  %v276_v47 = vsel %vm242_vm2, %v1237_v4, %v275_v38  ;;  %v423_v9 = vrot.slane %v1254_v17, 4 }
  0x49   : > { %v408_v46 = vsel %vm236_vm0, %v407_v41, %v406_v40  ;;  %v422_v14 = vsel %vm239_vm1, %v421_v36, %v420_v42  ;;  %v400_v48 = vsel %vm242_vm2, %v399_v39, %v398_v45  ;;  %v411_v49 = vrot.slane %v1254_v17, 3 }
  0x4a   : > { %342 = vrot.lane.b32.xlu1 %v341_v1, %s1102_s14  ;;  %v410_v15 = vsel %vm239_vm1, %v409_v44, %v408_v46  ;;  %vm221_vm3 = vcmask 408576   ;;  %v424_v50 = vsel %vm242_vm2, %v423_v9, %v422_v14  ;;  %vm294_vm4 = vcmask 68608  }
  0x4b   : > { %266 = vrot.lane.b32.xlu0 %v265_v35, %s1103_s15  ;;  %222 = vst.msk [vmem:[#allocation2 + $0x18] sm:$0xff] %vm221_vm3, %v1091_v0  ;;  %v412_v4 = vsel %vm242_vm2, %v411_v49, %v410_v15  ;;  %vm306_vm5 = vcmask 265352   ;;  %vm358_vm6 = vcmask 3072   ;;  %vm369_vm7 = vcmask 199752  }
  0x4c   : > { %vm318_vm8 = vcmask 462152   ;;  %vm247_vm9 = vcmask 330952   ;;  %vm258_vm10 = vcmask 527752   ;;  %vm380_vm11 = vcmask 396552  }
  0x4d   : > { %vm392_vm12 = vcmask 593352   ;;  %vm330_vm13 = vcmask 658952   ;;  %vm345_vm14 = vcmask 855752   ;;  %vm356_vm15 = vcmask 1044360  }
  0x4e   : > { %277 = vrot.lane.b32.xlu1 %v276_v47, %s1104_s21  ;;  %vm269_vm0 = vcmask 724552   ;;  %vm280_vm1 = vcmask 921352   ;;  %vm292_vm2 = vcmask 1044424   ;;  %vm404_vm3 = vcmask 790152   ;;  %s217_s21 = scalar_lea.vmem %s1452_s4, %s953_s13 }
  0x4f   : > { %401 = vrot.lane.b32.xlu0 %v400_v48, %s1105_s22  ;;  %v1117_v12 = vmov 0  }
  0x50   : > { %1022 = vset.pattern.permute.xlu0 %v1117_v12  ;;  %1023 = vset.pattern.permute.xlu1 %v1117_v12 }
  0x52   : > { %425 = vrot.lane.b32.xlu1 %v424_v50, %s1106_s25 }
  0x53   : > { %413 = vrot.lane.b32.xlu0 %v412_v4, %s1107_s26 }
  0xa8   : > { %v304_v51 = vpop.permute.xlu1 %303 }
  0xa9   : > { %v290_v17 = vpop.permute.xlu0 %289 }
  0xaa   : > { %295 = vst.msk [vmem:[#allocation2 + $0x8] sm:$0xf] %vm294_vm4, %v290_v17  ;;  %vm428_vm4 = vcmask 134152  }
  0xab   : > { %307 = vst.msk [vmem:[#allocation2 + $0x8] sm:$0xf] %vm306_vm5, %v304_v51  ;;  %vm416_vm5 = vcmask 986952  }
  0xac   : > { %v367_v52 = vpop.permute.xlu1 %366 }
  0xad   : > { %v354_v53 = vpop.permute.xlu0 %353 }
  0xae   : > { %359 = vst.msk [vmem:[#allocation2 + $0x10] sm:$0xf] %vm358_vm6, %v354_v53  ;;  %vm1116_vm6 = vmmov 0  }
  0xaf   : > { %370 = vst.msk [vmem:[#allocation2 + $0x10] sm:$0xf] %vm369_vm7, %v367_v52  ;;  %950 = vmatprep.mubr.msk.f32.mxu1 %vm1116_vm6, %v1091_v0  ;;  %vm634_vm7 = vcmask 637952  }
  0xb0   : > { %v316_v54 = vpop.permute.xlu1 %315 }
  0xb1   : > { %319 = vst.msk [vmem:[#allocation2 + $0x8] sm:$0xf] %vm318_vm8, %v316_v54  ;;  %v245_v55 = vpop.permute.xlu0 %244  ;;  %vm608_vm8 = vcmask 646144  }
  0xb2   : > { %248 = vst.msk [vmem:[#allocation2] sm:$0xf] %vm247_vm9, %v245_v55  ;;  %vm582_vm9 = vcmask 654336  }
  0xb4   : > { %v256_v56 = vpop.permute.xlu1 %255 }
  0xb5   : > { %259 = vst.msk [vmem:[#allocation2] sm:$0xf] %vm258_vm10, %v256_v56  ;;  %v378_v57 = vpop.permute.xlu0 %377  ;;  %vm556_vm10 = vcmask 834560  }
  0xb6   : > { %381 = vst.msk [vmem:[#allocation2 + $0x10] sm:$0xf] %vm380_vm11, %v378_v57  ;;  %vm530_vm11 = vcmask 842752  }
  0xb8   : > { %v390_v58 = vpop.permute.xlu1 %389 }
  0xb9   : > { %393 = vst.msk [vmem:[#allocation2 + $0x10] sm:$0xf] %vm392_vm12, %v390_v58  ;;  %v328_v59 = vpop.permute.xlu0 %327  ;;  %vm504_vm12 = vcmask 850944  }
  0xba   : > { %331 = vst.msk [vmem:[#allocation2 + $0x8] sm:$0xf] %vm330_vm13, %v328_v59  ;;  %vm478_vm13 = vcmask 1031168  }
  0xbc   : > { %v343_v60 = vpop.permute.xlu1 %342 }
  0xbd   : > { %346 = vst.msk [vmem:[#allocation2 + $0x8] sm:$0xf] %vm345_vm14, %v343_v60  ;;  %v267_v61 = vpop.permute.xlu0 %266  ;;  %vm452_vm14 = vcmask 1039360  }
  0xbe   : > { %357 = vst.msk [vmem:[#allocation2 + $0x8] sm:$0xf] %vm356_vm15, %v354_v53  ;;  %vm672_vm15 = vcmask 588800  }
  0xbf   : > { %270 = vst.msk [vmem:[#allocation2] sm:$0xf] %vm269_vm0, %v267_v61 }
  0xc0   : > { %v278_v62 = vpop.permute.xlu1 %277 }
  0xc1   : > { %281 = vst.msk [vmem:[#allocation2] sm:$0xf] %vm280_vm1, %v278_v62  ;;  %v402_v63 = vpop.permute.xlu0 %401  ;;  %v644_v62 = vld [vmem:[%s1449_s1] sm:$0xff] }
  0xc2   : > { %293 = vst.msk [vmem:[#allocation2] sm:$0xf] %vm292_vm2, %v290_v17 }
  0xc3   : > { %405 = vst.msk [vmem:[#allocation2 + $0x10] sm:$0xf] %vm404_vm3, %v402_v63 }
  0xc4   : > { %v426_v5 = vpop.permute.xlu1 %425 }
  0xc5   : > { %429 = vst.msk [vmem:[#allocation2 + $0x18] sm:$0xf] %vm428_vm4, %v426_v5  ;;  %v414_v6 = vpop.permute.xlu0 %413  ;;  %v1374_v11 = vld [vmem:[#allocation2 + $0x8] sm:$0xff] }
  0xc6   : > { %417 = vst.msk [vmem:[#allocation2 + $0x10] sm:$0xf] %vm416_vm5, %v414_v6 }
  0xc9   : > { %v1360_v7 = vld [vmem:[#allocation2] sm:$0xff] }
  0xca   : > { %600 = vrot.lane.b32.xlu1 %v1360_v7, %s1108_s27 }
  0xcc   : > { %v621_v8 = vld [vmem:[#allocation2 + $0x18] sm:$0xff] }
  0xcd   : > { %632 = vrot.lane.b32.xlu0 %v621_v8, %s1109_s28  ;;  %v1370_v10 = vld [vmem:[#allocation2 + $0x10] sm:$0xff] }
  0xce   : > { %574 = vrot.lane.b32.xlu1 %v1360_v7, %s1110_s29 }
  0xd1   : > { %606 = vrot.lane.b32.xlu0 %v621_v8, %s1108_s27 }
  0xd2   : > { %548 = vrot.lane.b32.xlu1 %v1360_v7, %s1111_s5 }
  0xd5   : > { %580 = vrot.lane.b32.xlu0 %v621_v8, %s1110_s29 }
  0xd6   : > { %522 = vrot.lane.b32.xlu1 %v1360_v7, %s1112_s9 }
  0xd9   : > { %554 = vrot.lane.b32.xlu0 %v621_v8, %s1111_s5 }
  0xda   : > { %496 = vrot.lane.b32.xlu1 %v1360_v7, %s1113_s18 }
  0xdd   : > { %528 = vrot.lane.b32.xlu0 %v621_v8, %s1112_s9 }
  0xde   : > { %470 = vrot.lane.b32.xlu1 %v1360_v7, %s1114_s24 }
  0xe1   : > { %502 = vrot.lane.b32.xlu0 %v621_v8, %s1113_s18 }
  0xe2   : > { %444 = vrot.lane.b32.xlu1 %v1360_v7, %s1115_s30 }
  0xe5   : > { %626 = vrot.lane.b32.xlu0 %v1360_v7, %s1109_s28 }
  0xe6   : > { %630 = vrot.lane.b32.xlu1 %v1370_v10, %s1109_s28 }
  0xe9   : > { %628 = vrot.lane.b32.xlu0 %v1374_v11, %s1109_s28 }
  0xea   : > { %602 = vrot.lane.b32.xlu1 %v1374_v11, %s1108_s27 }
  0xed   : > { %604 = vrot.lane.b32.xlu0 %v1370_v10, %s1108_s27 }
  0xee   : > { %576 = vrot.lane.b32.xlu1 %v1374_v11, %s1110_s29 }
  0xf1   : > { %578 = vrot.lane.b32.xlu0 %v1370_v10, %s1110_s29 }
  0xf2   : > { %550 = vrot.lane.b32.xlu1 %v1374_v11, %s1111_s5 }
  0xf5   : > { %552 = vrot.lane.b32.xlu0 %v1370_v10, %s1111_s5 }
  0xf6   : > { %524 = vrot.lane.b32.xlu1 %v1374_v11, %s1112_s9 }
  0xf9   : > { %526 = vrot.lane.b32.xlu0 %v1370_v10, %s1112_s9 }
  0xfa   : > { %498 = vrot.lane.b32.xlu1 %v1374_v11, %s1113_s18 }
  0xfd   : > { %500 = vrot.lane.b32.xlu0 %v1370_v10, %s1113_s18 }
  0xfe   : > { %472 = vrot.lane.b32.xlu1 %v1374_v11, %s1114_s24 }
 0x101   : > { %474 = vrot.lane.b32.xlu0 %v1370_v10, %s1114_s24 }
 0x102   : > { %446 = vrot.lane.b32.xlu1 %v1374_v11, %s1115_s30 }
 0x105   : > { %448 = vrot.lane.b32.xlu0 %v1370_v10, %s1115_s30 }
 0x106   : > { %450 = vrot.lane.b32.xlu1 %v621_v8, %s1115_s30 }
 0x109   : > { %476 = vrot.lane.b32.xlu0 %v621_v8, %s1114_s24 }
 0x10a   : > { %829 = vperm.xlu1 %1023, %v826_v13  }
 0x10d   : > { %820 = vperm.xlu0 %1022, %v817_v16  }
 0x13c   : > { %v601_v18 = vpop.permute.xlu1 %600 }
 0x13f   : > { %v633_v19 = vpop.permute.xlu0 %632 }
 0x140   : > { %v575_v20 = vpop.permute.xlu1 %574 }
 0x143   : > { %v607_v21 = vpop.permute.xlu0 %606 }
 0x144   : > { %v549_v22 = vpop.permute.xlu1 %548 }
 0x147   : > { %v581_v23 = vpop.permute.xlu0 %580 }
 0x148   : > { %v523_v24 = vpop.permute.xlu1 %522 }
 0x14b   : > { %v555_v25 = vpop.permute.xlu0 %554 }
 0x14c   : > { %v1401_v26 = vpop.permute.xlu1 %496 }
 0x14f   : > { %v529_v27 = vpop.permute.xlu0 %528 }
 0x150   : > { %v1403_v28 = vpop.permute.xlu1 %470 }
 0x153   : > { %v503_v29 = vpop.permute.xlu0 %502 }
 0x154   : > { %v1405_v30 = vpop.permute.xlu1 %444 }
 0x157   : > { %v627_v31 = vpop.permute.xlu0 %626 }
 0x158   : > { %v631_v32 = vpop.permute.xlu1 %630 }
 0x159   : > { %v637_v33 = vsel %vm634_vm7, %v631_v32, %v633_v19 }
 0x15a   : > { %933 = vmatpush3.msra.mxu1 %v637_v33 }
 0x15b   : > { %v629_v34 = vpop.permute.xlu0 %628  ;;  %934 = vmatprep.subr.mxu1 %v1091_v0 }
 0x15c   : > { %v603_v1 = vpop.permute.xlu1 %602  ;;  %v636_v2 = vsel %vm634_vm7, %v629_v34, %v631_v32  ;;  %v635_v35 = vsel %vm634_vm7, %v627_v31, %v629_v34 }
 0x15d   : > { %690 = vmatprep.subr.mxu0 %v636_v2  ;;  %v609_v39 = vsel %vm608_vm8, %v601_v18, %v603_v1 }
 0x15e   : > { %691 = vmatpush1.msra.mxu0 %v635_v35 }
 0x15f   : > { %v605_v36 = vpop.permute.xlu0 %604 }
 0x160   : > { %v577_v3 = vpop.permute.xlu1 %576  ;;  %v610_v37 = vsel %vm608_vm8, %v603_v1, %v605_v36  ;;  %v611_v38 = vsel %vm608_vm8, %v605_v36, %v607_v21 }
 0x161   : > { %692 = vmatprep.subr.mxu0 %v610_v37  ;;  %935 = vmatpush3.msra.mxu1 %v611_v38  ;;  %v583_v44 = vsel %vm582_vm9, %v575_v20, %v577_v3 }
 0x162   : > { %693 = vmatpush1.msra.mxu0 %v609_v39  ;;  %936 = vmatprep.subr.mxu1 %v1091_v0 }
 0x163   : > { %v579_v40 = vpop.permute.xlu0 %578 }
 0x164   : > { %v551_v41 = vpop.permute.xlu1 %550  ;;  %v584_v42 = vsel %vm582_vm9, %v577_v3, %v579_v40  ;;  %v585_v43 = vsel %vm582_vm9, %v579_v40, %v581_v23 }
 0x165   : > { %694 = vmatprep.subr.mxu0 %v584_v42  ;;  %937 = vmatpush3.msra.mxu1 %v585_v43  ;;  %v557_v14 = vsel %vm556_vm10, %v549_v22, %v551_v41 }
 0x166   : > { %695 = vmatpush1.msra.mxu0 %v583_v44  ;;  %938 = vmatprep.subr.mxu1 %v1091_v0 }
 0x167   : > { %v553_v45 = vpop.permute.xlu0 %552 }
 0x168   : > { %v525_v46 = vpop.permute.xlu1 %524  ;;  %v558_v47 = vsel %vm556_vm10, %v551_v41, %v553_v45  ;;  %v559_v9 = vsel %vm556_vm10, %v553_v45, %v555_v25 }
 0x169   : > { %696 = vmatprep.subr.mxu0 %v558_v47  ;;  %939 = vmatpush3.msra.mxu1 %v559_v9  ;;  %v531_v4 = vsel %vm530_vm11, %v523_v24, %v525_v46 }
 0x16a   : > { %697 = vmatpush1.msra.mxu0 %v557_v14  ;;  %940 = vmatprep.subr.mxu1 %v1091_v0 }
 0x16b   : > { %v527_v48 = vpop.permute.xlu0 %526 }
 0x16c   : > { %v499_v49 = vpop.permute.xlu1 %498  ;;  %v532_v15 = vsel %vm530_vm11, %v525_v46, %v527_v48  ;;  %v533_v50 = vsel %vm530_vm11, %v527_v48, %v529_v27 }
 0x16d   : > { %698 = vmatprep.subr.mxu0 %v532_v15  ;;  %941 = vmatpush3.msra.mxu1 %v533_v50  ;;  %v505_v54 = vsel %vm504_vm12, %v1401_v26, %v499_v49 }
 0x16e   : > { %699 = vmatpush1.msra.mxu0 %v531_v4  ;;  %942 = vmatprep.subr.mxu1 %v1091_v0 }
 0x16f   : > { %v501_v51 = vpop.permute.xlu0 %500 }
 0x170   : > { %v473_v17 = vpop.permute.xlu1 %472  ;;  %v506_v52 = vsel %vm504_vm12, %v499_v49, %v501_v51  ;;  %v507_v53 = vsel %vm504_vm12, %v501_v51, %v503_v29 }
 0x171   : > { %700 = vmatprep.subr.mxu0 %v506_v52  ;;  %943 = vmatpush3.msra.mxu1 %v507_v53  ;;  %v479_v58 = vsel %vm478_vm13, %v1403_v28, %v473_v17 }
 0x172   : > { %701 = vmatpush1.msra.mxu0 %v505_v54  ;;  %944 = vmatprep.subr.mxu1 %v1091_v0 }
 0x173   : > { %v475_v55 = vpop.permute.xlu0 %474 }
 0x174   : > { %v480_v56 = vsel %vm478_vm13, %v473_v17, %v475_v55  ;;  %v447_v57 = vpop.permute.xlu1 %446 }
 0x175   : > { %702 = vmatprep.subr.mxu0 %v480_v56  ;;  %v453_v61 = vsel %vm452_vm14, %v1405_v30, %v447_v57 }
 0x176   : > { %703 = vmatpush1.msra.mxu0 %v479_v58 }
 0x177   : > { %v449_v59 = vpop.permute.xlu0 %448 }
 0x178   : > { %v454_v60 = vsel %vm452_vm14, %v447_v57, %v449_v59  ;;  %v451_v63 = vpop.permute.xlu1 %450 }
 0x179   : > { %704 = vmatprep.subr.mxu0 %v454_v60  ;;  %v455_v8 = vsel %vm452_vm14, %v449_v59, %v451_v63 }
 0x17a   : > { %705 = vmatpush1.msra.mxu0 %v453_v61 }
 0x17b   : > { %v477_v5 = vpop.permute.xlu0 %476  ;;  %706 = vmatprep.subr.mxu0 %v1374_v11 }
 0x17c   : > { %707 = vmatpush1.msra.mxu0 %v1360_v7  ;;  %v481_v6 = vsel %vm478_vm13, %v475_v55, %v477_v5 }
 0x17d   : > { %945 = vmatpush3.msra.mxu1 %v481_v6  ;;  %917 = vmatmul.mubr.msk.f32.vlgmr.msra.gmra.mxu0 %vm672_vm15, %v644_v62 }
 0x17e   : > { %946 = vmatprep.subr.mxu1 %v1091_v0 }
 0x17f   : > { %947 = vmatpush3.msra.mxu1 %v455_v8 }
 0x180   : > { %948 = vmatprep.subr.mxu1 %v1091_v0 }
 0x181   : > { %949 = vmatpush3.msra.mxu1 %v1370_v10 }
 0x182   : > { %951 = vmatmul.mubr.msk.f32.vlgmr.msra.gmra.mxu1 %vm672_vm15, %v644_v62 }
 0x185   : > { %v830_v7 = vpop.permute.xlu1 %829 }
 0x188   : > { %v821_v12 = vpop.permute.xlu0 %820 }
 0x23d   : > { %v742_v11 = vpop.f32.mrf.mxu0 }
 0x23e   : > { %v823_v13 = vmul.f32 %v821_v12, %v742_v11 }
 0x23f   : > { %v744_v16 = vpop.f32.mrf.mxu0 }
 0x240   : > { %v824_v18 = vmul.f32 %v821_v12, %v744_v16  ;;  %v832_v19 = vadd.f32 %v830_v7, %v823_v13 }
 0x242   : > { %v813_v20 = vpop.f32.mrf.mxu1  ;;  %v833_v21 = vadd.f32 %v830_v7, %v824_v18  ;;  %v835_v0 = vmax.f32 %v832_v19, 0.0 }
 0x243   : > { %v825_v22 = vmul.f32 %v821_v12, %v813_v20 }
 0x244   : > { %v836_v10 = vmax.f32 %v833_v21, 0.0  ;;  %838 = vst [vmem:[%s217_s21] sm:$0xff] %v835_v0  ;;  %v952_v23 = vpop.f32.mrf.mxu1 }
 0x245   : > { %v834_v24 = vadd.f32 %v830_v7, %v825_v22 }
 0x246   : > { %839 = vst [vmem:[%s217_s21 + $0x8] sm:$0xff] %v836_v10 }
 0x247   : > { %v837_v25 = vmax.f32 %v834_v24, 0.0 }
 0x249   : > { %840 = vst [vmem:[%s217_s21 + $0x10] sm:$0xff] %v837_v25 }
 0x24a PF: > { %p14_p9 = scmp.ge.s32.totalorder %s1165_s20, 4   ;;  %s1458_s15 = smov %s1078_s16 }
 0x24b   : > { %s1459_s16 = smov %s1082_s17  ;;  %s1460_s17 = smov %s1175_s23 }
 0x24c   : > { %s1461_s18 = smov %s1165_s20  ;;  %16 = sbr.rel (!%p14_p9) target bundleno = 3 (0x3), region = 76 }
 0x251   :  { %862 = vsyncpa [#allocation5], 1 }
 0x252   :  { %864 = vsyncpa [#allocation5 + $0x1], 1 }

</bundles_post_ra>
